<compile_context>
chip_gen: v5e
topology: v5e:2x2
jax: 0.10.0
libtpu: 0.0.40
codegen_flags: <defaults>
</compile_context>

<pallas_src>
import functools

import jax
import jax.numpy as jnp
from jax.experimental import pallas as pl
from jax.experimental.pallas import tpu as pltpu


def _round_up(x, m):
    return ((x + m - 1) // m) * m


def _vmem_budget():
    """(physical VMEM per core, scoped-VMEM limit to request) in bytes."""
    cap = 64 * 1024 * 1024  # conservative default = v7x per-TensorCore VMEM
    try:
        info = pltpu.get_tpu_info()
        cap = int(getattr(info, "vmem_capacity_bytes", cap))
    except Exception:
        pass  # interpret/CPU lowering or older jax: keep conservative default
    limit = (cap * 3) // 4  # headroom for Mosaic-internal scratch
    return cap, limit


def _choose_td(Dp, K, in_b, vmem_limit):
    """Largest multiple-of-128 divisor of Dp whose (double-buffered) weight +
    bias tile fits in half the scoped-VMEM budget."""
    for td in range(Dp, 0, -128):
        if Dp % td == 0 and 2 * (K * td * in_b + td * 4) <= vmem_limit // 2:
            return td
    return 128


def _choose_tm(M, tm_cap):
    """Largest multiple-of-8 tile dividing round_up(M, 8) (no M padding, no
    output slice copy), preferring >=2 grid steps (megacore / pipelining) and
    multiples of 16 (bf16 sublane packing)."""
    Mp = _round_up(M, 8)
    cands = [t for t in range(8, min(tm_cap, Mp) + 1, 8) if Mp % t == 0]
    if not cands:
        cands = [8]

    def score(t):
        steps = Mp // t
        return (steps >= 2, t % 16 == 0, steps >= 4, t)

    return max(cands, key=score), Mp


# --------------------------------------------------------------------------
# Kernels
# --------------------------------------------------------------------------
def _fused_patch_kernel(x_ref, w_ref, b_ref, o_ref, *, th, nw, K, compute_dtype):
    # x_ref: (C, th, P, nw, P) raw NCHW slab = `th` rows of patches of one
    # image.  The im2col happens HERE in VMEM, so x is read from HBM exactly
    # once (no host-side transposed copy -> ~1.5-2x less HBM traffic on this
    # memory-bound op).  Relayouts are done in the input dtype (f32-friendly),
    # the bf16 cast happens on the final 2-D operand.
    xb = jnp.transpose(x_ref[...], (1, 3, 0, 2, 4))      # (th, nw, C, P, P)
    xb = xb.reshape(th * nw, K).astype(compute_dtype)    # (TM, K) patch rows
    acc = jnp.dot(xb, w_ref[...], preferred_element_type=jnp.float32)
    acc = acc + b_ref[...]                               # f32 bias epilogue
    o_ref[...] = acc.reshape(th, nw, -1).astype(o_ref.dtype)


def _gemm_bias_kernel(x_ref, w_ref, b_ref, o_ref):
    # x_ref: (TM, Kp) pre-patched rows, w_ref: (Kp, TD), b_ref: (1, TD) f32.
    acc = jnp.dot(x_ref[...], w_ref[...], preferred_element_type=jnp.float32)
    o_ref[...] = (acc + b_ref[...]).astype(o_ref.dtype)


# --------------------------------------------------------------------------
# Paths
# --------------------------------------------------------------------------
def _patch_embed_fused(x, wmat, bvec, P, out_dtype, compute_dtype,
                       vmem_cap, vmem_limit):
    """Fused path: im2col inside the kernel, x read from HBM exactly once."""
    B, C, H, W = x.shape
    nh, nw = H // P, W // P
    K, D = wmat.shape
    Dp = _round_up(D, 128)

    in_b = jnp.dtype(compute_dtype).itemsize
    x_b = jnp.dtype(x.dtype).itemsize
    out_b = jnp.dtype(out_dtype).itemsize

    wmat_p = jnp.pad(wmat, ((0, 0), (0, Dp - D))) if Dp != D else wmat
    bvec_p = jnp.pad(bvec, ((0, 0), (0, Dp - D))) if Dp != D else bvec

    # D tiling fallback so a huge K*D never has to be fully VMEM resident.
    TD = _choose_td(Dp, K, in_b, vmem_limit)
    n_d = Dp // TD

    # th = patch rows per grid step.  VMEM accounting counts double buffers for
    # x/out AND for the "resident" weight/bias, plus the in-kernel im2col temps.
    margin = 2 * 1024 * 1024
    budget = vmem_limit - 2 * (K * TD * in_b + TD * 4) - margin
    per_row = (2 * C * P * nw * P * x_b        # x slab (double-buffered)
               + 2 * nw * TD * out_b           # out slab (double-buffered)
               + nw * K * (x_b + in_b)         # transpose + cast temporaries
               + nw * TD * 4)                  # f32 accumulator
    max_th = max(1, budget // per_row)
    divs = [t for t in range(1, nh + 1) if nh % t == 0 and t <= max_th]

    def _score(t):
        steps = B * (nh // t) * n_d
        return (steps >= 2, steps >= 4, t)   # >=2 steps (megacore/pipeline)

    th = max(divs, key=_score) if divs else 1

    x6 = x.reshape(B, C, nh, P, nw, P)       # pure metadata: no data movement

    kernel = functools.partial(_fused_patch_kernel, th=th, nw=nw, K=K,
                               compute_dtype=compute_dtype)
    cost = pl.CostEstimate(
        flops=2 * B * nh * nw * K * D,
        transcendentals=0,
        bytes_accessed=(x.size * x_b + K * Dp * in_b + Dp * 4
                        + B * nh * nw * Dp * out_b),
    )

    out = pl.pallas_call(
        kernel,
        out_shape=jax.ShapeDtypeStruct((B, nh, nw, Dp), out_dtype),
        grid_spec=pl.GridSpec(
            grid=(B, nh // th, n_d),
            in_specs=[
                # raw NCHW slab; last two block dims equal the full array dims
                pl.BlockSpec((None, C, th, P, nw, P),
                             lambda b, i, j: (b, 0, i, 0, 0, 0)),
                pl.BlockSpec((K, TD), lambda b, i, j: (0, j)),   # weight
                pl.BlockSpec((1, TD), lambda b, i, j: (0, j)),   # bias
            ],
            out_specs=pl.BlockSpec((None, th, nw, TD),
                                   lambda b, i, j: (b, i, 0, j)),
        ),
        compiler_params=pltpu.CompilerParams(
            dimension_semantics=("parallel", "parallel", "parallel"),
            vmem_limit_bytes=vmem_limit,
        ),
        cost_estimate=cost,
    )(x6, wmat_p, bvec_p)

    out = out.reshape(B, nh * nw, Dp)        # free when no D padding
    if Dp != D:
        out = out[:, :, :D]
    return out


def _patch_embed_prepatched(x, wmat, bvec, P, out_dtype, compute_dtype,
                            vmem_cap, vmem_limit):
    """Fallback path: host-side im2col (cast fused with the transpose), then a
    tiled/pipelined GEMM.  Always lowers."""
    B, C, H, W = x.shape
    nh, nw = H // P, W // P
    K, D = wmat.shape
    M = B * nh * nw

    in_b = jnp.dtype(compute_dtype).itemsize
    out_b = jnp.dtype(out_dtype).itemsize

    Kp = _round_up(K, 128)
    Dp = _round_up(D, 128)

    xp = x.astype(compute_dtype).reshape(B, C, nh, P, nw, P)
    xp = xp.transpose(0, 2, 4, 1, 3, 5).reshape(M, K)    # one extra HBM pass

    wmat_p = jnp.pad(wmat, ((0, Kp - K), (0, Dp - D))) if (Kp, Dp) != (K, D) else wmat
    bvec_p = jnp.pad(bvec, ((0, 0), (0, Dp - D))) if Dp != D else bvec

    TD = _choose_td(Dp, Kp, in_b, vmem_limit)
    n_d = Dp // TD

    margin = 2 * 1024 * 1024
    budget = vmem_limit - 2 * (Kp * TD * in_b + TD * 4) - margin
    per_row = 2 * (Kp * in_b + TD * out_b)
    tm_gen_cap = 1024 if vmem_cap > 100 * 1024 * 1024 else 512  # v5e/v6e vs v7x
    tm_cap = max(8, min(tm_gen_cap, (budget // per_row) // 8 * 8))
    TM, Mp = _choose_tm(M, tm_cap)

    if Mp != M:
        xp = jnp.pad(xp, ((0, Mp - M), (0, Kp - K)))
    elif Kp != K:
        xp = jnp.pad(xp, ((0, 0), (0, Kp - K)))

    cost = pl.CostEstimate(
        flops=2 * M * K * D,
        transcendentals=0,
        bytes_accessed=(Mp * Kp * in_b + Kp * Dp * in_b + Dp * 4
                        + Mp * Dp * out_b),
    )

    out = pl.pallas_call(
        _gemm_bias_kernel,
        out_shape=jax.ShapeDtypeStruct((Mp, Dp), out_dtype),
        grid_spec=pl.GridSpec(
            grid=(Mp // TM, n_d),
            in_specs=[
                pl.BlockSpec((TM, Kp), lambda i, j: (i, 0)),   # patches: streamed
                pl.BlockSpec((Kp, TD), lambda i, j: (0, j)),   # weight tile
                pl.BlockSpec((1, TD), lambda i, j: (0, j)),    # bias tile
            ],
            out_specs=pl.BlockSpec((TM, TD), lambda i, j: (i, j)),
        ),
        compiler_params=pltpu.CompilerParams(
            dimension_semantics=("parallel", "parallel"),
            vmem_limit_bytes=vmem_limit,
        ),
        cost_estimate=cost,
    )(xp, wmat_p, bvec_p)

    if Mp != M or Dp != D:
        out = out[:M, :D]
    return out.reshape(B, nh * nw, D)


# --------------------------------------------------------------------------
# Public entry point
# --------------------------------------------------------------------------
def patch_embed(x, weight, bias, patch_size, *, out_dtype=None,
                compute_dtype=jnp.bfloat16, fuse_patches=True):
    """VQ-KD PatchEmbed forward.

    x:      (B, C, H, W)  NCHW, like the PyTorch module's Conv2d input.
    weight: (D, C, P, P)  Conv2d weight.
    bias:   (D,)          Conv2d bias.
    returns (B, (H//P)*(W//P), D), patches row-major over the (H//P, W//P)
    grid, matching flatten(2).transpose(1, 2).

    out_dtype: pass jnp.bfloat16 if downstream accepts it (halves the output
    HBM write).  compute_dtype=jnp.float32 gives exact f32-conv parity at the
    cost of MXU rate.
    """
    B, C, H, W = x.shape
    P = patch_size
    D = weight.shape[0]
    K = C * P * P
    nh, nw = H // P, W // P
    if H != nh * P or W != nw * P:          # Conv2d(stride=P) drops the tail
        x = x[:, :, : nh * P, : nw * P]
    if out_dtype is None:
        out_dtype = x.dtype

    # One-time parameter prep ((c, ph, pw) K-order matches both kernel paths).
    # Hoist this to param init if called per microbatch; under jit with frozen
    # params it constant-folds.
    wmat = weight.reshape(D, K).T.astype(compute_dtype)   # (K, D)
    bvec = bias.astype(jnp.float32).reshape(1, D)

    vmem_cap, vmem_limit = _vmem_budget()
    args = (x, wmat, bvec, P, out_dtype, compute_dtype, vmem_cap, vmem_limit)

    if fuse_patches:
        try:
            return _patch_embed_fused(*args)
        except Exception:
            # Mosaic could not lower the in-kernel im2col (transpose/reshape)
            # for this shape / jax version -> use the host-side im2col GEMM.
            # (Only catchable when called eagerly; pass fuse_patches=False if
            #  the fused path is known not to lower for your shapes under jit.)
            pass
    return _patch_embed_prepatched(*args)


if __name__ == "__main__":
    # Small shapes consistent with the module: img_size=16, patch_size=4,
    # in_chans=4, embed_dim=32, batch=2  ->  num_patches = (16//4)**2 = 16.
    B, C, H, W = 2, 4, 16, 16
    P, D = 4, 32

    key = jax.random.PRNGKey(0)
    kx, kw, kb = jax.random.split(key, 3)
    x = jax.random.normal(kx, (B, C, H, W), dtype=jnp.float32)
    weight = jax.random.normal(kw, (D, C, P, P), dtype=jnp.float32) * 0.02
    bias = jax.random.normal(kb, (D,), dtype=jnp.float32) * 0.02

    out = patch_embed(x, weight, bias, P)
    out = jax.block_until_ready(out)

    # Reference: real strided conv with the same bf16-cast operands (f32
    # accumulation), then flatten(2).transpose(1, 2).
    ref = jax.lax.conv_general_dilated(
        x.astype(jnp.bfloat16), weight.astype(jnp.bfloat16),
        window_strides=(P, P), padding="VALID",
        dimension_numbers=("NCHW", "OIHW", "NCHW"),
        preferred_element_type=jnp.float32,
    ) + bias.reshape(1, D, 1, 1)
    ref = ref.reshape(B, D, -1).transpose(0, 2, 1).astype(x.dtype)

    assert out.shape == (B, (H // P) * (W // P), D)
    assert jnp.allclose(out, ref, atol=2e-3, rtol=2e-3)
    print("KERNEL_OK")
</pallas_src>

<mosaic_0001>
module attributes {stable_mosaic.version = 11 : i64} {
  func.func @_fused_patch_kernel(%arg0: i32, %arg1: i32, %arg2: i32, %arg3: memref<1x4x2x4x4x4xf32, #tpu.memory_space<vmem>>, %arg4: memref<64x128xbf16, #tpu.memory_space<vmem>>, %arg5: memref<1x128xf32, #tpu.memory_space<vmem>>, %arg6: memref<1x2x4x128xf32, #tpu.memory_space<vmem>>) attributes {dimension_semantics = [#tpu.dimension_semantics<parallel>, #tpu.dimension_semantics<parallel>, #tpu.dimension_semantics<parallel>], iteration_bounds = array<i64: 2, 2, 1>, scalar_prefetch = 0 : i64, scratch_operands = 0 : i64, tpu.core_type = #tpu.core_type<tc>, window_params = [{transform_indices = @transform_0, window_bounds = array<i64: 1, 4, 2, 4, 4, 4>}, {transform_indices = @transform_1, window_bounds = array<i64: 64, 128>}, {transform_indices = @transform_2, window_bounds = array<i64: 1, 128>}, {transform_indices = @transform_3, window_bounds = array<i64: 1, 2, 4, 128>}]} {
    %c0 = arith.constant 0 : index
    %c0_0 = arith.constant 0 : index
    %c0_1 = arith.constant 0 : index
    %c0_2 = arith.constant 0 : index
    %c0_3 = arith.constant 0 : index
    %c0_4 = arith.constant 0 : index
    %0 = vector.load %arg3[%c0, %c0_0, %c0_1, %c0_2, %c0_3, %c0_4] : memref<1x4x2x4x4x4xf32, #tpu.memory_space<vmem>>, vector<1x4x2x4x4x4xf32>
    %1 = vector.shape_cast %0 : vector<1x4x2x4x4x4xf32> to vector<4x2x4x4x4xf32>
    %2 = tpu.transpose %1, [1, 3, 0, 2, 4] : vector<4x2x4x4x4xf32> -> vector<2x4x4x4x4xf32>
    %3 = vector.shape_cast %2 : vector<2x4x4x4x4xf32> to vector<8x64xf32>
    %4 = arith.truncf %3 : vector<8x64xf32> to vector<8x64xbf16>
    %c0_5 = arith.constant 0 : index
    %c0_6 = arith.constant 0 : index
    %5 = vector.load %arg4[%c0_5, %c0_6] : memref<64x128xbf16, #tpu.memory_space<vmem>>, vector<64x128xbf16>
    %cst = arith.constant dense<0.000000e+00> : vector<8x128xf32>
    %6 = tpu.matmul %4, %5, %cst {dimension_numbers = #tpu.dot_dimension_numbers<[1], [0], [0], [1], [0, 0, 1, 1], [], []>} : vector<8x64xbf16>, vector<64x128xbf16>, vector<8x128xf32> -> vector<8x128xf32>
    %c0_7 = arith.constant 0 : index
    %c0_8 = arith.constant 0 : index
    %7 = vector.load %arg5[%c0_7, %c0_8] : memref<1x128xf32, #tpu.memory_space<vmem>>, vector<1x128xf32>
    %8 = vector.broadcast %7 : vector<1x128xf32> to vector<8x128xf32>
    %9 = arith.addf %6, %8 : vector<8x128xf32>
    %10 = vector.shape_cast %9 : vector<8x128xf32> to vector<2x4x128xf32>
    %c0_9 = arith.constant 0 : index
    %c0_10 = arith.constant 0 : index
    %c0_11 = arith.constant 0 : index
    %c0_12 = arith.constant 0 : index
    %11 = vector.load %arg6[%c0_9, %c0_10, %c0_11, %c0_12] : memref<1x2x4x128xf32, #tpu.memory_space<vmem>>, vector<1x2x4x128xf32>
    %12 = vector.shape_cast %11 : vector<1x2x4x128xf32> to vector<2x4x128xf32>
    %13 = vector.shape_cast %10 : vector<2x4x128xf32> to vector<1x2x4x128xf32>
    tpu.vector_store %arg6[%c0_9, %c0_10, %c0_11, %c0_12], %13 {strides = array<i32>} : memref<1x2x4x128xf32, #tpu.memory_space<vmem>>, vector<1x2x4x128xf32>,
    return
  }
  func.func @transform_0(%arg0: i32, %arg1: i32, %arg2: i32) -> (i32, i32, i32, i32, i32, i32) {
    %c0_i32 = arith.constant 0 : i32
    %c0_i32_0 = arith.constant 0 : i32
    %c0_i32_1 = arith.constant 0 : i32
    %c0_i32_2 = arith.constant 0 : i32
    %c0_i32_3 = arith.constant 0 : i32
    return %arg0, %c0_i32, %arg1, %c0_i32_0, %c0_i32_1, %c0_i32_2 : i32, i32, i32, i32, i32, i32
  }
  func.func @transform_1(%arg0: i32, %arg1: i32, %arg2: i32) -> (i32, i32) {
    %c0_i32 = arith.constant 0 : i32
    %c0_i32_0 = arith.constant 0 : i32
    return %c0_i32, %arg2 : i32, i32
  }
  func.func @transform_2(%arg0: i32, %arg1: i32, %arg2: i32) -> (i32, i32) {
    %c0_i32 = arith.constant 0 : i32
    %c0_i32_0 = arith.constant 0 : i32
    return %c0_i32, %arg2 : i32, i32
  }
  func.func @transform_3(%arg0: i32, %arg1: i32, %arg2: i32) -> (i32, i32, i32, i32) {
    %c0_i32 = arith.constant 0 : i32
    %c0_i32_0 = arith.constant 0 : i32
    return %arg0, %arg1, %c0_i32, %arg2 : i32, i32, i32, i32
  }
}

module attributes {stable_mosaic.version = 11 : i64} {
  func.func @_gemm_bias_kernel(%arg0: i32, %arg1: i32, %arg2: memref<16x128xbf16, #tpu.memory_space<vmem>>, %arg3: memref<128x128xbf16, #tpu.memory_space<vmem>>, %arg4: memref<1x128xf32, #tpu.memory_space<vmem>>, %arg5: memref<16x128xf32, #tpu.memory_space<vmem>>) attributes {dimension_semantics = [#tpu.dimension_semantics<parallel>, #tpu.dimension_semantics<parallel>], iteration_bounds = array<i64: 2, 1>, scalar_prefetch = 0 : i64, scratch_operands = 0 : i64, tpu.core_type = #tpu.core_type<tc>, window_params = [{transform_indices = @transform_0, window_bounds = array<i64: 16, 128>}, {transform_indices = @transform_1, window_bounds = array<i64: 128, 128>}, {transform_indices = @transform_2, window_bounds = array<i64: 1, 128>}, {transform_indices = @transform_3, window_bounds = array<i64: 16, 128>}]} {
    %c0 = arith.constant 0 : index
    %c0_0 = arith.constant 0 : index
    %0 = vector.load %arg2[%c0, %c0_0] : memref<16x128xbf16, #tpu.memory_space<vmem>>, vector<16x128xbf16>
    %c0_1 = arith.constant 0 : index
    %c0_2 = arith.constant 0 : index
    %1 = vector.load %arg3[%c0_1, %c0_2] : memref<128x128xbf16, #tpu.memory_space<vmem>>, vector<128x128xbf16>
    %cst = arith.constant dense<0.000000e+00> : vector<16x128xf32>
    %2 = tpu.matmul %0, %1, %cst {dimension_numbers = #tpu.dot_dimension_numbers<[1], [0], [0], [1], [0, 0, 1, 1], [], []>} : vector<16x128xbf16>, vector<128x128xbf16>, vector<16x128xf32> -> vector<16x128xf32>
    %c0_3 = arith.constant 0 : index
    %c0_4 = arith.constant 0 : index
    %3 = vector.load %arg4[%c0_3, %c0_4] : memref<1x128xf32, #tpu.memory_space<vmem>>, vector<1x128xf32>
    %4 = vector.broadcast %3 : vector<1x128xf32> to vector<16x128xf32>
    %5 = arith.addf %2, %4 : vector<16x128xf32>
    %c0_5 = arith.constant 0 : index
    %c0_6 = arith.constant 0 : index
    %6 = vector.load %arg5[%c0_5, %c0_6] : memref<16x128xf32, #tpu.memory_space<vmem>>, vector<16x128xf32>
    tpu.vector_store %arg5[%c0_5, %c0_6], %5 {strides = array<i32>} : memref<16x128xf32, #tpu.memory_space<vmem>>, vector<16x128xf32>,
    return
  }
  func.func @transform_0(%arg0: i32, %arg1: i32) -> (i32, i32) {
    %c0_i32 = arith.constant 0 : i32
    %c0_i32_0 = arith.constant 0 : i32
    return %arg0, %c0_i32 : i32, i32
  }
  func.func @transform_1(%arg0: i32, %arg1: i32) -> (i32, i32) {
    %c0_i32 = arith.constant 0 : i32
    %c0_i32_0 = arith.constant 0 : i32
    return %c0_i32, %arg1 : i32, i32
  }
  func.func @transform_2(%arg0: i32, %arg1: i32) -> (i32, i32) {
    %c0_i32 = arith.constant 0 : i32
    %c0_i32_0 = arith.constant 0 : i32
    return %c0_i32, %arg1 : i32, i32
  }
  func.func @transform_3(%arg0: i32, %arg1: i32) -> (i32, i32) {
    %c0_i32 = arith.constant 0 : i32
    return %arg0, %arg1 : i32, i32
  }
}

</mosaic_0001>

<bundles_post_ra>
// kernel: tpu_custom_call.1
= control target key start
LH: loop header
LB: loop body
LE: loop exit
PB: predicated region body
PF: predicated region fallthrough
CT: control target
= control target key end

     0   :  { %s936_s0 = inlined_call_operand.hbm [shape: bf16[32,128], index: 0, kind: input, shape index: {}]   ;;  %s937_s1 = inlined_call_operand.hbm [shape: bf16[128,128], index: 1, kind: input, shape index: {}]   ;;  %s938_s2 = inlined_call_operand.vmem [shape: f32[1,128], index: 2, kind: input, shape index: {}]   ;;  %s939_s3 = inlined_call_operand.hbm [shape: f32[32,128], index: 3, kind: output, shape index: {}]  }
   0x1   :  { %941 = sst [smem:[#allocation11_spill]] %s937_s1 }
   0x2   :  { %8 = vsyncpa [#allocation3], 0 }
   0x3   :  { %10 = vsyncpa [#allocation3 + $0x1], 0 }
   0x4   :  { %11 = vsyncpa [#allocation6], 0 }
   0x5   :  { %12 = vsyncpa [#allocation4], 0 }
   0x6   :  { %14 = vsyncpa [#allocation4 + $0x1], 0  ;;  %s777_s12 = smov 0   ;;  %s779_s13 = smov 0  }
   0x7   :  { %s781_s14 = smov 0   ;;  %s783_s15 = smov 0  }
   0x8   :  { %s785_s16 = smov 0   ;;  %s787_s17 = smov 0  }
   0x9 LB: > { %s461_s18 = sadd.s32 4294967295, %s750_s17   ;;  %s462_s19 = sadd.s32 4294967294, %s750_s17   ;;  %s750_s17 = sphi %s787_s17, %s20_s17   ;;  %s746_s16 = sphi %s785_s16, %s955_s16   ;;  %s742_s15 = sphi %s783_s15, %s954_s15   ;;  %s738_s14 = sphi %s781_s14, %s953_s14   ;;  %s734_s13 = sphi %s779_s13, %s952_s13   ;;  %s730_s12 = sphi %s777_s12, %s951_s12  }
   0xa   : > { %p52_p0 = scmp.ne.s32.totalorder %s734_s13, %s730_s12  ;;  %p811_p1 = scmp.eq.s32.totalorder %s461_s18, 0 }
   0xb   : > { %p815_p2 = scmp.eq.s32.totalorder %s461_s18, 1  ;;  %p136_p3 = scmp.eq.s32.totalorder %s462_s19, 1 }
   0xc   : > { %p821_p4 = por %p811_p1, %p52_p0  ;;  %p463_p5 = scmp.ge.s32.totalorder %s750_s17, 1 }
   0xd   : > { %p826_p6 = por %p136_p3, %p52_p0  ;;  %p143_p7 = scmp.lt.s32.totalorder %s750_s17, 3 }
   0xe   : > { %s946_s1 = sld [smem:[#allocation11_spill]]  ;;  %s752_s28 = smov [#allocation5]  }
   0xf   : > { %p834_p8 = pnand %p463_p5, %p143_p7  ;;  %s158_s29 = sshll.u32 %s752_s28, 4  ;;  %s159_s29 = int_to_ptr.vmem [resolvable:$true] %s158_s29 }
  0x10   : > { %p466_p11 = scmp.ge.s32.totalorder %s750_s17, 2  ;;  %s940_s30 = smov 64  }
  0x11   : > { %p534_p9 = pneg %p834_p8  ;;  %s754_s4 = smov 4  }
  0x12   : > { %s32_s5 = sadd.s32 1, %s746_s16  ;;  %s39_s6 = sadd.s32 1, %s738_s14 }
  0x13   : > { %p535_p10 = pnand %p534_p9, %p811_p1  ;;  %p34_p12 = scmp.ge.s32.totalorder %s32_s5, 2 }
  0x14   : > { %s156_s26 = sshll.u32 %s946_s1, 4  ;;  %p46_p13 = scmp.ne.s32.totalorder %s738_s14, %s734_s13  ;;  %s157_s26 = int_to_ptr.hbm [resolvable:$true] %s156_s26 }
  0x15   : > { %537 = dma.hbm_to_vmem [thread:$0]  (!%p535_p10), %s157_s26, 1024, %s159_s29, [#allocation6], %s940_s30, %s940_s30, %s754_s4  }
  0x16   : > { %p47_p0 = scmp.eq.s32.totalorder %s750_s17, 0  ;;  %s957_s5 = smov (%p34_p12, %s32_s5), 0 }
  0x17   : > { %p859_p5 = por %p815_p2, %p46_p13  ;;  %s36_s9 = ssub.s32 %s746_s16, %s957_s5 }
  0x18   : > { %p853_p3 = por %p47_p0, %p46_p13  ;;  %p547_p7 = scmp.lt.s32.totalorder %s750_s17, 2 }
  0x19   : > { %p37_p9 = scmp.eq.s32.totalorder %s36_s9, 0  ;;  %s178_s10 = sand.u32 1, %s738_s14  }
  0x1a   : > { %s467_s11 = sshll.u32 %s178_s10, 3  ;;  %s515_s19 = sshll.u32 %s746_s16, 3 }
  0x1b   : > { %s868_s18 = scalar_select %p37_p9, %s738_s14, %s39_s6  }
  0x1c   : > { %s187_s26 = scalar_lea.hbm %s936_s0, %s515_s19  ;;  %s182_s28 = scalar_lea.vmem [#allocation2], %s467_s11 }
  0x1d   : > { %s190_s29 = sshll.u32 %s182_s28, 4  ;;  %s188_s21 = sshll.u32 %s187_s26, 4  ;;  %s191_s29 = int_to_ptr.vmem [resolvable:$true] %s190_s29  ;;  %s189_s21 = int_to_ptr.hbm [resolvable:$true] %s188_s21 }
  0x1e   : > { %p539_p2 = pnand %p547_p7, %p853_p3  ;;  %s179_s30 = scalar_lea.sflag [#allocation3], %s178_s10 }
  0x1f   : > { %s950_s1 = smov 64   ;;  %202 = sbr.rel (%p834_p8) target bundleno = 211 (0xd3), region = 32 }
  0x20   : > { %541 = dma.hbm_to_vmem [thread:$0]  (!%p539_p2), %s189_s21, 128, %s191_s29, %s179_s30, %s950_s1, %s950_s1, %s754_s4  }
  0x21   : > { %s882_s6 = sand.u32 (!%p834_p8), 1, %s734_s13  }
  0x22   : > { %s471_s9 = sshll.u32 (!%p834_p8), %s882_s6, 3  ;;  %s205_s11 = scalar_lea.sflag (!%p834_p8), [#allocation3], %s882_s6 }
  0x23   : > { %s208_s19 = scalar_lea.vmem (!%p834_p8), [#allocation2], %s471_s9 }
  0x24   : > { %717 = dma.done.wait (%p821_p4), %s205_s11, 128  }
  0x25   : > { %719 = vsyncadd (%p821_p4), %s205_s11, 4294967168 }
  0x26   : > { %721 = dma.done.wait (%p811_p1), [#allocation6], 1024  }
  0x27   : > { %723 = vsyncadd (%p811_p1), [#allocation6], 4294966272  ;;  %v524_v0 = vld [vmem:[#allocation5 + $0x38] sm:$0xff]  ;;  %v523_v1 = vld [vmem:[#allocation5 + $0x30] sm:$0xff]  ;;  %s473_s1 = sshll.u32 %s882_s6, 4  ;;  %s525_s27 = sshll.u32 %s742_s15, 4 }
  0x28   : > { %321 = vmatpush.bf16.msra.mxu0 %v524_v0  ;;  %v522_v2 = vld [vmem:[#allocation5 + $0x28] sm:$0xff]  ;;  %v521_v3 = vld [vmem:[#allocation5 + $0x20] sm:$0xff]  ;;  %v520_v4 = vld [vmem:[#allocation5 + $0x18] sm:$0xff]  ;;  %s350_s7 = scalar_lea.hbm %s939_s3, %s525_s27  ;;  %s239_s10 = scalar_lea.vmem [#allocation7], %s473_s1 }
  0x29   : > { %v519_v5 = vld [vmem:[#allocation5 + $0x10] sm:$0xff]  ;;  %v518_v6 = vld [vmem:[#allocation5 + $0x8] sm:$0xff]  ;;  %v517_v7 = vld [vmem:[#allocation5] sm:$0xff]  ;;  %s351_s24 = sshll.u32 %s239_s10, 4  ;;  %s353_s25 = sshll.u32 %s350_s7, 4  ;;  %s352_s24 = int_to_ptr.vmem [resolvable:$true] %s351_s24  ;;  %s354_s25 = int_to_ptr.hbm [resolvable:$true] %s353_s25 }
  0x2a   : > { %v516_v8 = vld [vmem:[%s208_s19] sm:$0xff]  ;;  %s338_s26 = scalar_lea.sflag [#allocation4], %s882_s6  ;;  %s678_s28 = sshra.s32 %s354_s25, 4  ;;  %s679_s28 = int_to_ptr.hbm [resolvable:$true] %s678_s28 }
  0x2b   : > { %v603_v9 = vld [vmem:[%s938_s2] ss:$0 sm:$0xff]  ;;  %s680_s15 = scalar_lea.hbm %s679_s28, 16  ;;  %s684_s9 = scalar_lea.hbm %s939_s3, 32 }
  0x2c   : > { %322 = vmatpush.bf16.msra.mxu0 %v523_v1  ;;  %p681_p1 = scmp.ne.s32.totalorder %s679_s28, %s680_s15  ;;  %p685_p10 = scmp.lt.s32.totalorder %s679_s28, %s939_s3 }
  0x2d   : > { %p686_p12 = scmp.lt.s32.totalorder %s684_s9, %s680_s15 }
  0x2e   : > { %p682_p4 = pnand %p681_p1, %p859_p5 }
  0x2f   : > { %p687_p13 = por %p686_p12, %p685_p10 }
  0x30   : > { %323 = vmatpush.bf16.msra.mxu0 %v522_v2  ;;  %p683_p8 = pneg %p682_p4 }
  0x32   : > { %p688_p0 = pnand %p687_p13, %p683_p8 }
  0x34   : > { %324 = vmatpush.bf16.msra.mxu0 %v521_v3 }
  0x38   : > { %325 = vmatpush.bf16.msra.mxu0 %v520_v4 }
  0x3c   : > { %326 = vmatpush.bf16.msra.mxu0 %v519_v5 }
  0x40   : > { %327 = vmatpush.bf16.msra.mxu0 %v518_v6 }
  0x44   : > { %328 = vmatpush.bf16.msra.mxu0 %v517_v7 }
  0x47   : > { %329 = vmatmul.bf16.vlgmr.msra.gmra.mxu0 %v516_v8 }
  0xc4   : > { %v330_v10 = vpop.f32.mrf.mxu0 }
  0xc5   : > { %v331_v11 = vadd.f32 %v603_v9, %v330_v10 }
  0xc7   : > { %335 = vst [vmem:[%s239_s10] sm:$0xff] %v331_v11 }
  0xcc   : > { %v332_v12 = vpop.f32.mrf.mxu0 }
  0xcd   : > { %v333_v13 = vadd.f32 %v603_v9, %v332_v12 }
  0xcf   : > { %336 = vst [vmem:[%s239_s10 + $0x8] sm:$0xff] %v333_v13 }
  0xd0   : > { %691 = shalt.err (!%p688_p0)
}
  0xd1   : > { %s755_s6 = smov 128   ;;  %s756_s1 = smov 8  }
  0xd2   : > { %532 = dma.vmem_to_hbm [thread:$0]  (%p859_p5), %s352_s24, 256, %s354_s25, %s338_s26, %s755_s6, %s755_s6, %s756_s1  }
  0xd3 PF: > { %s368_s20 = sand.u32 1, %s730_s12   ;;  %p543_p3 = pnand %p466_p11, %p826_p6 }
  0xd4   : > { %s369_s22 = scalar_lea.sflag [#allocation4], %s368_s20 }
  0xd5   : > { %p544_p7 = pneg %p543_p3 }
  0xd7   : > { %725 = dma.done.wait (%p544_p7), %s369_s22, 256  }
  0xd8   : > { %727 = vsyncadd (%p544_p7), %s369_s22, 4294967040  ;;  %s20_s17 = sadd.s32 1, %s750_s17   ;;  %s951_s12 = smov %s734_s13 }
  0xd9   : > { %p17_p9 = scmp.ge.s32.totalorder %s20_s17, 4   ;;  %s952_s13 = smov %s738_s14 }
  0xda   : > { %s953_s14 = smov %s868_s18  ;;  %s954_s15 = smov %s746_s16 }
  0xdb   : > { %s955_s16 = smov %s957_s5  ;;  %19 = sbr.rel (!%p17_p9) target bundleno = 9 (0x9), region = 85 }
  0xe0   :  { %375 = vsyncpa [#allocation3], 1 }
  0xe1   :  { %377 = vsyncpa [#allocation3 + $0x1], 1 }
  0xe2   :  { %378 = vsyncpa [#allocation6], 1 }
  0xe3   :  { %379 = vsyncpa [#allocation4], 1 }
  0xe4   :  { %381 = vsyncpa [#allocation4 + $0x1], 1 }

</bundles_post_ra>
